<compile_context>
chip_gen: v7x
topology: tpu7x:2x2x1
jax: 0.10.0
libtpu: 0.0.40
codegen_flags: <defaults>
</compile_context>

<pallas_src>
import functools

import jax
import jax.numpy as jnp
from jax.experimental import pallas as pl
from jax.experimental.pallas import tpu as pltpu


def _round_up(x, m):
    return (x + m - 1) // m * m


def _pick_tm(M, tm_cap=512):
    """Row tile: >=2 grid steps when possible (v7x has 2 TCs), 8-aligned,
    multiples of 128 once big enough (128-row LHS tiles feed the MXU)."""
    if M <= 8:
        return 8
    tm = min(tm_cap, _round_up(-(-M // 2), 8))
    if tm >= 128:
        tm = (tm // 128) * 128
    return tm


def _mlp_kernel(*refs, num_layers):
    # refs = (x_ref, w0, b0, w1, b1, ..., w_{L-1}, b_{L-1}, o_ref)
    x_ref = refs[0]
    o_ref = refs[1 + 2 * num_layers]
    h = x_ref[...]                                    # [tm, K0] f32
    for l in range(num_layers):
        w = refs[1 + 2 * l][...]                      # [K_l, N_l] bf16 (resident)
        b = refs[2 + 2 * l][...]                      # [1,  N_l] f32  (resident)
        y = jnp.dot(h.astype(w.dtype), w,             # MXU, f32 accumulation
                    preferred_element_type=jnp.float32)
        y = y + b
        if l != num_layers - 1:
            y = jnp.maximum(y, 0.0)                   # fused ReLU (f32, VPU)
        h = y                                         # stays on-chip, never hits HBM
    o_ref[...] = h.astype(o_ref.dtype)


def init_mlp_params(key, input_size, output_size, layer_sizes=()):
    """PyTorch nn.Linear default init: U(-1/sqrt(fan_in), 1/sqrt(fan_in)).
    Returns params in PyTorch layout: [(w [N, K] f32, b [N] f32), ...]."""
    sizes = [input_size] + list(layer_sizes) + [output_size]
    params = []
    for fan_in, fan_out in zip(sizes[:-1], sizes[1:]):
        key, kw, kb = jax.random.split(key, 3)
        bound = 1.0 / float(jnp.sqrt(jnp.float32(fan_in)))
        w = jax.random.uniform(kw, (fan_out, fan_in), jnp.float32, -bound, bound)
        b = jax.random.uniform(kb, (fan_out,), jnp.float32, -bound, bound)
        params.append((w, b))
    return params


def prepare_params(params, mxu_dtype=jnp.bfloat16):
    """One-time conversion: w [N, K] -> wt [K, N] in bf16; b -> [1, N] f32.
    Done once, so the forward pass never pays a transpose/cast HBM pass."""
    prepared = []
    for w, b in params:
        prepared.append((jnp.transpose(w).astype(mxu_dtype),
                         b.reshape(1, -1).astype(jnp.float32)))
    return prepared


def mlp_forward(x, prepared_params, *, tm_cap=512):
    """Fused MLP forward (norm_type=None, activation=ReLU):
    Linear -> ReLU -> ... -> Linear, all inside one pallas_call."""
    M, K0 = x.shape
    num_layers = len(prepared_params)
    n_last = prepared_params[-1][0].shape[1]

    tm = _pick_tm(M, tm_cap)
    Mp = _round_up(M, tm)
    xp = jnp.pad(x, ((0, Mp - M), (0, 0))) if Mp != M else x   # pad once, whole MLP
    grid = (Mp // tm,)

    flat_params = []
    for wt, b in prepared_params:
        flat_params += [wt, b]

    flops = sum(2 * Mp * wt.shape[0] * wt.shape[1] for wt, _ in prepared_params)
    bytes_accessed = (4 * Mp * K0 + 4 * Mp * n_last
                      + sum(wt.size * wt.dtype.itemsize + b.size * 4
                            for wt, b in prepared_params))

    kern = functools.partial(_mlp_kernel, num_layers=num_layers)

    def build(single_buffer_weights):
        in_specs = [pl.BlockSpec((tm, K0), lambda i: (i, 0))]   # activation tile
        for wt, _ in prepared_params:
            K, N = wt.shape
            if single_buffer_weights:
                # Constant index_map -> one buffer is enough; halves VMEM footprint.
                in_specs.append(pl.BlockSpec((K, N), lambda i: (0, 0),
                                             pipeline_mode=pl.Buffered(1)))
                in_specs.append(pl.BlockSpec((1, N), lambda i: (0, 0),
                                             pipeline_mode=pl.Buffered(1)))
            else:
                in_specs.append(pl.BlockSpec((K, N), lambda i: (0, 0)))
                in_specs.append(pl.BlockSpec((1, N), lambda i: (0, 0)))
        return pl.pallas_call(
            kern,
            out_shape=jax.ShapeDtypeStruct((Mp, n_last), x.dtype),
            grid_spec=pltpu.PrefetchScalarGridSpec(
                num_scalar_prefetch=0,
                grid=grid,
                in_specs=in_specs,
                out_specs=pl.BlockSpec((tm, n_last), lambda i: (i, 0)),
            ),
            compiler_params=pltpu.CompilerParams(
                dimension_semantics=("parallel",),
                vmem_limit_bytes=48 << 20,   # explicit; fits v7x 64 MiB physical
            ),
            cost_estimate=pl.CostEstimate(
                flops=flops, transcendentals=0, bytes_accessed=bytes_accessed),
        )

    try:
        out = build(True)(xp, *flat_params)
    except Exception:
        # Fallback for builds without BlockSpec(pipeline_mode=...): default
        # double-buffered resident weights (fine for small layers).
        out = build(False)(xp, *flat_params)

    return out[:M] if Mp != M else out


def _reference_forward_f32(x, params):
    """Plain-JAX f32 reference reproducing the PyTorch MLP forward."""
    n = len(params)
    for i, (w, b) in enumerate(params):
        x = x @ w.T + b
        if i != n - 1:
            x = jnp.maximum(x, 0.0)
    return x


def _reference_forward_mixed(x, prepared_params):
    """Plain-JAX reference mirroring the kernel math (bf16 MXU inputs, f32 accum)."""
    n = len(prepared_params)
    h = x
    for i, (wt, b) in enumerate(prepared_params):
        h = jnp.dot(h.astype(wt.dtype), wt,
                    preferred_element_type=jnp.float32) + b
        if i != n - 1:
            h = jnp.maximum(h, 0.0)
    return h


if __name__ == "__main__":
    # MLP(input_size=32, output_size=16, layer_sizes=[64, 64], activation=ReLU,
    #     norm_type=None); batch = 64.
    key = jax.random.PRNGKey(0)
    key, kx = jax.random.split(key)
    x = jax.random.normal(kx, (64, 32), jnp.float32)   # [batch, input_size]

    params = init_mlp_params(key, input_size=32, output_size=16,
                             layer_sizes=[64, 64])
    prepared = prepare_params(params)

    out = jax.block_until_ready(mlp_forward(x, prepared))
    assert out.shape == (64, 16), out.shape

    # Tight check vs. a reference that mirrors the kernel's bf16-MXU/f32-accum math.
    ref_mixed = jax.block_until_ready(_reference_forward_mixed(x, prepared))
    assert jnp.allclose(out, ref_mixed, rtol=1e-3, atol=1e-3), (
        float(jnp.max(jnp.abs(out - ref_mixed))))

    # Loose check vs. the full-f32 PyTorch-equivalent forward (bf16 weight cast).
    ref_f32 = jax.block_until_ready(_reference_forward_f32(x, params))
    assert jnp.allclose(out, ref_f32, rtol=3e-2, atol=3e-2), (
        float(jnp.max(jnp.abs(out - ref_f32))))

    print("KERNEL_OK")
</pallas_src>

<mosaic_0001>
module attributes {stable_mosaic.version = 11 : i64} {
  func.func @_mlp_kernel(%arg0: i32, %arg1: memref<32x32xf32, #tpu.memory_space<vmem>>, %arg2: memref<32x64xbf16, #tpu.memory_space<vmem>>, %arg3: memref<1x64xf32, #tpu.memory_space<vmem>>, %arg4: memref<64x64xbf16, #tpu.memory_space<vmem>>, %arg5: memref<1x64xf32, #tpu.memory_space<vmem>>, %arg6: memref<64x16xbf16, #tpu.memory_space<vmem>>, %arg7: memref<1x16xf32, #tpu.memory_space<vmem>>, %arg8: memref<32x16xf32, #tpu.memory_space<vmem>>) attributes {dimension_semantics = [#tpu.dimension_semantics<parallel>], iteration_bounds = array<i64: 2>, scalar_prefetch = 0 : i64, scratch_operands = 0 : i64, tpu.core_type = #tpu.core_type<tc>, window_params = [{transform_indices = @transform_0, window_bounds = array<i64: 32, 32>}, {pipeline_mode = #tpu.pipeline_mode<synchronous>, transform_indices = @transform_1, window_bounds = array<i64: 32, 64>}, {pipeline_mode = #tpu.pipeline_mode<synchronous>, transform_indices = @transform_2, window_bounds = array<i64: 1, 64>}, {pipeline_mode = #tpu.pipeline_mode<synchronous>, transform_indices = @transform_3, window_bounds = array<i64: 64, 64>}, {pipeline_mode = #tpu.pipeline_mode<synchronous>, transform_indices = @transform_4, window_bounds = array<i64: 1, 64>}, {pipeline_mode = #tpu.pipeline_mode<synchronous>, transform_indices = @transform_5, window_bounds = array<i64: 64, 16>}, {pipeline_mode = #tpu.pipeline_mode<synchronous>, transform_indices = @transform_6, window_bounds = array<i64: 1, 16>}, {transform_indices = @transform_7, window_bounds = array<i64: 32, 16>}]} {
    %c0 = arith.constant 0 : index
    %c0_0 = arith.constant 0 : index
    %0 = vector.load %arg1[%c0, %c0_0] : memref<32x32xf32, #tpu.memory_space<vmem>>, vector<32x32xf32>
    %c0_1 = arith.constant 0 : index
    %c0_2 = arith.constant 0 : index
    %1 = vector.load %arg2[%c0_1, %c0_2] : memref<32x64xbf16, #tpu.memory_space<vmem>>, vector<32x64xbf16>
    %c0_3 = arith.constant 0 : index
    %c0_4 = arith.constant 0 : index
    %2 = vector.load %arg3[%c0_3, %c0_4] : memref<1x64xf32, #tpu.memory_space<vmem>>, vector<1x64xf32>
    %3 = arith.truncf %0 : vector<32x32xf32> to vector<32x32xbf16>
    %cst = arith.constant dense<0.000000e+00> : vector<32x64xf32>
    %4 = tpu.matmul %3, %1, %cst {dimension_numbers = #tpu.dot_dimension_numbers<[1], [0], [0], [1], [0, 0, 1, 1], [], []>} : vector<32x32xbf16>, vector<32x64xbf16>, vector<32x64xf32> -> vector<32x64xf32>
    %5 = vector.broadcast %2 : vector<1x64xf32> to vector<32x64xf32>
    %6 = arith.addf %4, %5 : vector<32x64xf32>
    %cst_5 = arith.constant 0.000000e+00 : f32
    %7 = vector.broadcast %cst_5 : f32 to vector<32x64xf32>
    %8 = arith.maximumf %6, %7 : vector<32x64xf32>
    %c0_6 = arith.constant 0 : index
    %c0_7 = arith.constant 0 : index
    %9 = vector.load %arg4[%c0_6, %c0_7] : memref<64x64xbf16, #tpu.memory_space<vmem>>, vector<64x64xbf16>
    %c0_8 = arith.constant 0 : index
    %c0_9 = arith.constant 0 : index
    %10 = vector.load %arg5[%c0_8, %c0_9] : memref<1x64xf32, #tpu.memory_space<vmem>>, vector<1x64xf32>
    %11 = arith.truncf %8 : vector<32x64xf32> to vector<32x64xbf16>
    %cst_10 = arith.constant dense<0.000000e+00> : vector<32x64xf32>
    %12 = tpu.matmul %11, %9, %cst_10 {dimension_numbers = #tpu.dot_dimension_numbers<[1], [0], [0], [1], [0, 0, 1, 1], [], []>} : vector<32x64xbf16>, vector<64x64xbf16>, vector<32x64xf32> -> vector<32x64xf32>
    %13 = vector.broadcast %10 : vector<1x64xf32> to vector<32x64xf32>
    %14 = arith.addf %12, %13 : vector<32x64xf32>
    %cst_11 = arith.constant 0.000000e+00 : f32
    %15 = vector.broadcast %cst_11 : f32 to vector<32x64xf32>
    %16 = arith.maximumf %14, %15 : vector<32x64xf32>
    %c0_12 = arith.constant 0 : index
    %c0_13 = arith.constant 0 : index
    %17 = vector.load %arg6[%c0_12, %c0_13] : memref<64x16xbf16, #tpu.memory_space<vmem>>, vector<64x16xbf16>
    %c0_14 = arith.constant 0 : index
    %c0_15 = arith.constant 0 : index
    %18 = vector.load %arg7[%c0_14, %c0_15] : memref<1x16xf32, #tpu.memory_space<vmem>>, vector<1x16xf32>
    %19 = arith.truncf %16 : vector<32x64xf32> to vector<32x64xbf16>
    %cst_16 = arith.constant dense<0.000000e+00> : vector<32x16xf32>
    %20 = tpu.matmul %19, %17, %cst_16 {dimension_numbers = #tpu.dot_dimension_numbers<[1], [0], [0], [1], [0, 0, 1, 1], [], []>} : vector<32x64xbf16>, vector<64x16xbf16>, vector<32x16xf32> -> vector<32x16xf32>
    %21 = vector.broadcast %18 : vector<1x16xf32> to vector<32x16xf32>
    %22 = arith.addf %20, %21 : vector<32x16xf32>
    %c0_17 = arith.constant 0 : index
    %c0_18 = arith.constant 0 : index
    %23 = vector.load %arg8[%c0_17, %c0_18] : memref<32x16xf32, #tpu.memory_space<vmem>>, vector<32x16xf32>
    tpu.vector_store %arg8[%c0_17, %c0_18], %22 {strides = array<i32>} : memref<32x16xf32, #tpu.memory_space<vmem>>, vector<32x16xf32>,
    return
  }
  func.func @transform_0(%arg0: i32) -> (i32, i32) {
    %c0_i32 = arith.constant 0 : i32
    %c0_i32_0 = arith.constant 0 : i32
    return %arg0, %c0_i32 : i32, i32
  }
  func.func @transform_1(%arg0: i32) -> (i32, i32) {
    %c0_i32 = arith.constant 0 : i32
    %c0_i32_0 = arith.constant 0 : i32
    %c0_i32_1 = arith.constant 0 : i32
    return %c0_i32, %c0_i32_0 : i32, i32
  }
  func.func @transform_2(%arg0: i32) -> (i32, i32) {
    %c0_i32 = arith.constant 0 : i32
    %c0_i32_0 = arith.constant 0 : i32
    %c0_i32_1 = arith.constant 0 : i32
    return %c0_i32, %c0_i32_0 : i32, i32
  }
  func.func @transform_3(%arg0: i32) -> (i32, i32) {
    %c0_i32 = arith.constant 0 : i32
    %c0_i32_0 = arith.constant 0 : i32
    %c0_i32_1 = arith.constant 0 : i32
    return %c0_i32, %c0_i32_0 : i32, i32
  }
  func.func @transform_4(%arg0: i32) -> (i32, i32) {
    %c0_i32 = arith.constant 0 : i32
    %c0_i32_0 = arith.constant 0 : i32
    %c0_i32_1 = arith.constant 0 : i32
    return %c0_i32, %c0_i32_0 : i32, i32
  }
  func.func @transform_5(%arg0: i32) -> (i32, i32) {
    %c0_i32 = arith.constant 0 : i32
    %c0_i32_0 = arith.constant 0 : i32
    %c0_i32_1 = arith.constant 0 : i32
    return %c0_i32, %c0_i32_0 : i32, i32
  }
  func.func @transform_6(%arg0: i32) -> (i32, i32) {
    %c0_i32 = arith.constant 0 : i32
    %c0_i32_0 = arith.constant 0 : i32
    %c0_i32_1 = arith.constant 0 : i32
    return %c0_i32, %c0_i32_0 : i32, i32
  }
  func.func @transform_7(%arg0: i32) -> (i32, i32) {
    %c0_i32 = arith.constant 0 : i32
    %c0_i32_0 = arith.constant 0 : i32
    return %arg0, %c0_i32 : i32, i32
  }
}

module attributes {stable_mosaic.version = 11 : i64} {
  func.func @_mlp_kernel(%arg0: i32, %arg1: memref<32x32xf32, #tpu.memory_space<vmem>>, %arg2: memref<32x64xbf16, #tpu.memory_space<vmem>>, %arg3: memref<1x64xf32, #tpu.memory_space<vmem>>, %arg4: memref<64x64xbf16, #tpu.memory_space<vmem>>, %arg5: memref<1x64xf32, #tpu.memory_space<vmem>>, %arg6: memref<64x16xbf16, #tpu.memory_space<vmem>>, %arg7: memref<1x16xf32, #tpu.memory_space<vmem>>, %arg8: memref<32x16xf32, #tpu.memory_space<vmem>>) attributes {dimension_semantics = [#tpu.dimension_semantics<parallel>], iteration_bounds = array<i64: 2>, scalar_prefetch = 0 : i64, scratch_operands = 0 : i64, tpu.core_type = #tpu.core_type<tc>, window_params = [{transform_indices = @transform_0, window_bounds = array<i64: 32, 32>}, {pipeline_mode = #tpu.pipeline_mode<synchronous>, transform_indices = @transform_1, window_bounds = array<i64: 32, 64>}, {pipeline_mode = #tpu.pipeline_mode<synchronous>, transform_indices = @transform_2, window_bounds = array<i64: 1, 64>}, {pipeline_mode = #tpu.pipeline_mode<synchronous>, transform_indices = @transform_3, window_bounds = array<i64: 64, 64>}, {pipeline_mode = #tpu.pipeline_mode<synchronous>, transform_indices = @transform_4, window_bounds = array<i64: 1, 64>}, {pipeline_mode = #tpu.pipeline_mode<synchronous>, transform_indices = @transform_5, window_bounds = array<i64: 64, 16>}, {pipeline_mode = #tpu.pipeline_mode<synchronous>, transform_indices = @transform_6, window_bounds = array<i64: 1, 16>}, {transform_indices = @transform_7, window_bounds = array<i64: 32, 16>}]} {
    %c0 = arith.constant 0 : index
    %c0_0 = arith.constant 0 : index
    %0 = vector.load %arg1[%c0, %c0_0] : memref<32x32xf32, #tpu.memory_space<vmem>>, vector<32x32xf32>
    %c0_1 = arith.constant 0 : index
    %c0_2 = arith.constant 0 : index
    %1 = vector.load %arg2[%c0_1, %c0_2] : memref<32x64xbf16, #tpu.memory_space<vmem>>, vector<32x64xbf16>
    %c0_3 = arith.constant 0 : index
    %c0_4 = arith.constant 0 : index
    %2 = vector.load %arg3[%c0_3, %c0_4] : memref<1x64xf32, #tpu.memory_space<vmem>>, vector<1x64xf32>
    %3 = arith.truncf %0 : vector<32x32xf32> to vector<32x32xbf16>
    %cst = arith.constant dense<0.000000e+00> : vector<32x64xf32>
    %4 = tpu.matmul %3, %1, %cst {dimension_numbers = #tpu.dot_dimension_numbers<[1], [0], [0], [1], [0, 0, 1, 1], [], []>} : vector<32x32xbf16>, vector<32x64xbf16>, vector<32x64xf32> -> vector<32x64xf32>
    %5 = vector.broadcast %2 : vector<1x64xf32> to vector<32x64xf32>
    %6 = arith.addf %4, %5 : vector<32x64xf32>
    %cst_5 = arith.constant 0.000000e+00 : f32
    %7 = vector.broadcast %cst_5 : f32 to vector<32x64xf32>
    %8 = arith.maximumf %6, %7 : vector<32x64xf32>
    %c0_6 = arith.constant 0 : index
    %c0_7 = arith.constant 0 : index
    %9 = vector.load %arg4[%c0_6, %c0_7] : memref<64x64xbf16, #tpu.memory_space<vmem>>, vector<64x64xbf16>
    %c0_8 = arith.constant 0 : index
    %c0_9 = arith.constant 0 : index
    %10 = vector.load %arg5[%c0_8, %c0_9] : memref<1x64xf32, #tpu.memory_space<vmem>>, vector<1x64xf32>
    %11 = arith.truncf %8 : vector<32x64xf32> to vector<32x64xbf16>
    %cst_10 = arith.constant dense<0.000000e+00> : vector<32x64xf32>
    %12 = tpu.matmul %11, %9, %cst_10 {dimension_numbers = #tpu.dot_dimension_numbers<[1], [0], [0], [1], [0, 0, 1, 1], [], []>} : vector<32x64xbf16>, vector<64x64xbf16>, vector<32x64xf32> -> vector<32x64xf32>
    %13 = vector.broadcast %10 : vector<1x64xf32> to vector<32x64xf32>
    %14 = arith.addf %12, %13 : vector<32x64xf32>
    %cst_11 = arith.constant 0.000000e+00 : f32
    %15 = vector.broadcast %cst_11 : f32 to vector<32x64xf32>
    %16 = arith.maximumf %14, %15 : vector<32x64xf32>
    %c0_12 = arith.constant 0 : index
    %c0_13 = arith.constant 0 : index
    %17 = vector.load %arg6[%c0_12, %c0_13] : memref<64x16xbf16, #tpu.memory_space<vmem>>, vector<64x16xbf16>
    %c0_14 = arith.constant 0 : index
    %c0_15 = arith.constant 0 : index
    %18 = vector.load %arg7[%c0_14, %c0_15] : memref<1x16xf32, #tpu.memory_space<vmem>>, vector<1x16xf32>
    %19 = arith.truncf %16 : vector<32x64xf32> to vector<32x64xbf16>
    %cst_16 = arith.constant dense<0.000000e+00> : vector<32x16xf32>
    %20 = tpu.matmul %19, %17, %cst_16 {dimension_numbers = #tpu.dot_dimension_numbers<[1], [0], [0], [1], [0, 0, 1, 1], [], []>} : vector<32x64xbf16>, vector<64x16xbf16>, vector<32x16xf32> -> vector<32x16xf32>
    %21 = vector.broadcast %18 : vector<1x16xf32> to vector<32x16xf32>
    %22 = arith.addf %20, %21 : vector<32x16xf32>
    %c0_17 = arith.constant 0 : index
    %c0_18 = arith.constant 0 : index
    %23 = vector.load %arg8[%c0_17, %c0_18] : memref<32x16xf32, #tpu.memory_space<vmem>>, vector<32x16xf32>
    tpu.vector_store %arg8[%c0_17, %c0_18], %22 {strides = array<i32>} : memref<32x16xf32, #tpu.memory_space<vmem>>, vector<32x16xf32>,
    return
  }
  func.func @transform_0(%arg0: i32) -> (i32, i32) {
    %c0_i32 = arith.constant 0 : i32
    %c0_i32_0 = arith.constant 0 : i32
    return %arg0, %c0_i32 : i32, i32
  }
  func.func @transform_1(%arg0: i32) -> (i32, i32) {
    %c0_i32 = arith.constant 0 : i32
    %c0_i32_0 = arith.constant 0 : i32
    %c0_i32_1 = arith.constant 0 : i32
    return %c0_i32, %c0_i32_0 : i32, i32
  }
  func.func @transform_2(%arg0: i32) -> (i32, i32) {
    %c0_i32 = arith.constant 0 : i32
    %c0_i32_0 = arith.constant 0 : i32
    %c0_i32_1 = arith.constant 0 : i32
    return %c0_i32, %c0_i32_0 : i32, i32
  }
  func.func @transform_3(%arg0: i32) -> (i32, i32) {
    %c0_i32 = arith.constant 0 : i32
    %c0_i32_0 = arith.constant 0 : i32
    %c0_i32_1 = arith.constant 0 : i32
    return %c0_i32, %c0_i32_0 : i32, i32
  }
  func.func @transform_4(%arg0: i32) -> (i32, i32) {
    %c0_i32 = arith.constant 0 : i32
    %c0_i32_0 = arith.constant 0 : i32
    %c0_i32_1 = arith.constant 0 : i32
    return %c0_i32, %c0_i32_0 : i32, i32
  }
  func.func @transform_5(%arg0: i32) -> (i32, i32) {
    %c0_i32 = arith.constant 0 : i32
    %c0_i32_0 = arith.constant 0 : i32
    %c0_i32_1 = arith.constant 0 : i32
    return %c0_i32, %c0_i32_0 : i32, i32
  }
  func.func @transform_6(%arg0: i32) -> (i32, i32) {
    %c0_i32 = arith.constant 0 : i32
    %c0_i32_0 = arith.constant 0 : i32
    %c0_i32_1 = arith.constant 0 : i32
    return %c0_i32, %c0_i32_0 : i32, i32
  }
  func.func @transform_7(%arg0: i32) -> (i32, i32) {
    %c0_i32 = arith.constant 0 : i32
    %c0_i32_0 = arith.constant 0 : i32
    return %arg0, %c0_i32 : i32, i32
  }
}

</mosaic_0001>

<bundles_post_ra>
// kernel: tpu_custom_call.1
= control target key start
LH: loop header
LB: loop body
LE: loop exit
PB: predicated region body
PF: predicated region fallthrough
CT: control target
= control target key end

     0   :  { %s774_s24 = smov 0   ;;  %s841_s0 = inlined_call_operand.vmem [shape: f32[64,32], index: 0, kind: input, shape index: {}]   ;;  %s842_s1 = inlined_call_operand.vmem [shape: bf16[32,64], index: 1, kind: input, shape index: {}]   ;;  %s843_s2 = inlined_call_operand.vmem [shape: f32[1,64], index: 2, kind: input, shape index: {}]   ;;  %s844_s3 = inlined_call_operand.vmem [shape: bf16[64,64], index: 3, kind: input, shape index: {}]   ;;  %s845_s4 = inlined_call_operand.vmem [shape: f32[1,64], index: 4, kind: input, shape index: {}]   ;;  %s846_s5 = inlined_call_operand.vmem [shape: bf16[64,16], index: 5, kind: input, shape index: {}]   ;;  %s847_s6 = inlined_call_operand.vmem [shape: f32[1,16], index: 6, kind: input, shape index: {}]   ;;  %s848_s7 = inlined_call_operand.vmem [shape: f32[64,16], index: 7, kind: output, shape index: {}]  }
   0x1 LB: > { %s630_s25 = sadd.s32 4294967295, %s732_s24   ;;  %p634_p0 = scmp.ge.s32.totalorder %s732_s24, 1  ;;  %s732_s24 = sphi %s774_s24, %s17_s24  }
   0x2   : > { %p238_p1 = scmp.lt.s32.totalorder %s732_s24, 3 }
   0x4   : > { %p239_p2 = pnand %p634_p0, %p238_p1 }
   0x5   : > { %v716_v0 = vld [vmem:[%s842_s1] sm:$0xff] (!%p239_p2)   ;;  %s635_s28 = sshll.u32 (!%p239_p2), %s630_s25, 2  ;;  %v717_v1 = vld [vmem:[%s842_s1 + $0x8] sm:$0xff] (!%p239_p2)   ;;  %vm312_vm0 = vcmask (!%p239_p2), 261120   ;;  %v720_v10 = vld [vmem:[%s844_s3 + $0x10] sm:$0xff] (!%p239_p2)   ;;  %vm413_vm1 = vcmask (!%p239_p2), 523264  }
   0x6   : > { %242 = sbr.rel (%p239_p2) target bundleno = 682 (0x2aa), region = 48  ;;  %p271_p3 = scmp.lt.s32.totalorder (!%p239_p2), %s635_s28, 7  ;;  %676 = vmatprep.subr.bf16.mxu0 (!%p239_p2), %v716_v0  ;;  %v718_v2 = vld [vmem:[%s844_s3] sm:$0xff] (!%p239_p2)   ;;  %v719_v3 = vld [vmem:[%s844_s3 + $0x8] sm:$0xff] (!%p239_p2)   ;;  %v721_v11 = vld [vmem:[%s844_s3 + $0x18] sm:$0xff] (!%p239_p2)   ;;  %vm569_vm2 = vcmask (!%p239_p2), 130048  }
   0x7   : > { %677 = vmatpush3.bf16.msra.mxu0 (!%p239_p2), %v716_v0  ;;  %684 = vmatprep.subr.bf16.mxu1 (!%p239_p2), %v718_v2  ;;  %v722_v12 = vld [vmem:[%s846_s5] sm:$0xff] (!%p239_p2)   ;;  %v723_v13 = vld [vmem:[%s846_s5 + $0x8] sm:$0xff] (!%p239_p2)   ;;  %v724_v29 = vld [vmem:[%s846_s5 + $0x10] sm:$0xff] (!%p239_p2)  }
   0x8   : > { %678 = vmatprep.subr.bf16.mxu0 (!%p239_p2), %v717_v1  ;;  %685 = vmatpush3.bf16.msra.mxu1 (!%p239_p2), %v718_v2  ;;  %v639_v14 = vld [vmem:[%s843_s2] ss:$0 sm:$0xff] (!%p239_p2)  ;;  %v725_v30 = vld [vmem:[%s846_s5 + $0x18] sm:$0xff] (!%p239_p2)  }
   0x9   : > { %686 = vmatprep.subr.bf16.mxu1 (!%p239_p2), %v719_v3  ;;  %v644_v31 = vld [vmem:[%s845_s4] ss:$0 sm:$0xff] (!%p239_p2) }
   0xa   : > { %v651_v46 = vld [vmem:[%s847_s6] ss:$0 sm:$0xff] (!%p239_p2) }
   0xb   : > { %679 = vmatpush3.bf16.msra.mxu0 (!%p239_p2), %v717_v1 }
   0xc   : > { %687 = vmatpush3.bf16.msra.mxu1 (!%p239_p2), %v719_v3  ;;  %696 = vmatprep.subr.bf16.mxu0 (!%p239_p2), %v722_v12 }
   0xd   : > { %s850_s28 = smov (!%p271_p3, %s635_s28), 7  ;;  %688 = vmatprep.subr.bf16.mxu1 %v720_v10 }
   0xe   : > { %s636_s12 = sshll.u32 %s850_s28, 3 }
   0xf   : > { %s274_s15 = scalar_lea.vmem %s841_s0, %s636_s12  ;;  %s280_s16 = scalar_lea.vmem %s848_s7, %s636_s12 }
  0x10   : > { %v283_v4 = vld [vmem:[%s274_s15] sm:$0xff]  ;;  %v284_v5 = vld [vmem:[%s274_s15 + $0x8] sm:$0xff]  ;;  %v285_v6 = vld [vmem:[%s274_s15 + $0x10] sm:$0xff]  ;;  %689 = vmatpush3.bf16.msra.mxu1 %v720_v10 }
  0x11   : > { %v292_v7 = vpack.c.bf16 %v284_v5, %v283_v4  ;;  %v286_v8 = vld [vmem:[%s274_s15 + $0x18] sm:$0xff]  ;;  %690 = vmatprep.subr.bf16.mxu1 %v721_v11 }
  0x12   : > { %v293_v9 = vpack.c.bf16 %v286_v8, %v285_v6 }
  0x13   : > { %680 = vmatprep.mubr.msk.bf16.mxu0 %vm312_vm0, %v292_v7 }
  0x14   : > { %681 = vmatmul.mubr.msk.bf16.vlgmr.msra.gmra.mrb[0].mxu0 %vm312_vm0, %v293_v9  ;;  %691 = vmatpush3.bf16.msra.mxu1 %v721_v11 }
  0x15   : > { %697 = vmatpush3.bf16.msra.mxu0 %v722_v12 }
  0x16   : > { %698 = vmatprep.subr.bf16.mxu0 %v723_v13 }
  0x19   : > { %699 = vmatpush3.bf16.msra.mxu0 %v723_v13 }
  0x1a   : > { %700 = vmatprep.subr.bf16.mxu0 %v724_v29 }
  0x1d   : > { %701 = vmatpush3.bf16.msra.mxu0 %v724_v29 }
  0x1e   : > { %702 = vmatprep.subr.bf16.mxu0 %v725_v30 }
  0x21   : > { %703 = vmatpush3.bf16.msra.mxu0 %v725_v30 }
  0xe7   : > { %v682_v15 = vpop.f32.mrb[0].mxu0 }
  0xe8   : > { %v362_v16 = vadd.f32 %v682_v15, %v639_v14  ;;  %v353_v17 = vpop.f32.mrb[1].mxu0 }
  0xe9   : > { %v354_v18 = vadd.f32 %v639_v14, %v353_v17  ;;  %v683_v19 = vpop.f32.mrb[2].mxu0 }
  0xea   : > { %v365_v20 = vadd.f32 %v683_v19, %v639_v14  ;;  %v356_v21 = vpop.f32.mrb[3].mxu0  ;;  %v370_v23 = vmax.f32 %v362_v16, 0.0 }
  0xeb   : > { %v357_v22 = vadd.f32 %v639_v14, %v356_v21  ;;  %v368_v25 = vmax.f32 %v354_v18, 0.0 }
  0xec   : > { %v371_v24 = vmax.f32 %v365_v20, 0.0 }
  0xed   : > { %v369_v26 = vmax.f32 %v357_v22, 0.0 }
  0xee   : > { %v382_v27 = vpack.c.bf16 %v371_v24, %v370_v23 }
  0xef   : > { %v381_v28 = vpack.c.bf16 %v369_v26, %v368_v25 }
  0xf1   : > { %692 = vmatprep.mubr.msk.bf16.mxu1 %vm413_vm1, %v381_v28 }
  0xf2   : > { %693 = vmatmul.mubr.msk.bf16.vlgmr.msra.gmra.mrb[0].mxu1 %vm413_vm1, %v382_v27 }
 0x1c5   : > { %v694_v32 = vpop.f32.mrb[0].mxu1 }
 0x1c6   : > { %v463_v33 = vadd.f32 %v694_v32, %v644_v31  ;;  %v454_v34 = vpop.f32.mrb[1].mxu1 }
 0x1c7   : > { %v455_v35 = vadd.f32 %v644_v31, %v454_v34  ;;  %v695_v36 = vpop.f32.mrb[2].mxu1 }
 0x1c8   : > { %v466_v37 = vadd.f32 %v695_v36, %v644_v31  ;;  %v457_v38 = vpop.f32.mrb[3].mxu1  ;;  %v471_v40 = vmax.f32 %v463_v33, 0.0 }
 0x1c9   : > { %v458_v39 = vadd.f32 %v644_v31, %v457_v38  ;;  %v469_v42 = vmax.f32 %v455_v35, 0.0 }
 0x1ca   : > { %v472_v41 = vmax.f32 %v466_v37, 0.0 }
 0x1cb   : > { %v470_v43 = vmax.f32 %v458_v39, 0.0 }
 0x1cc   : > { %v483_v44 = vpack.c.bf16 %v472_v41, %v471_v40 }
 0x1cd   : > { %v482_v45 = vpack.c.bf16 %v470_v43, %v469_v42 }
 0x1cf   : > { %704 = vmatprep.mubr.msk.bf16.mxu0 %vm413_vm1, %v482_v45 }
 0x1d0   : > { %705 = vmatmul.mubr.msk.bf16.vlgmr.msra.gmra.mrb[4].mxu0 %vm413_vm1, %v483_v44 }
 0x2a3   : > { %v706_v47 = vpop.f32.mrb[4].mxu0 }
 0x2a4   : > { %v554_v48 = vpop.f32.mrb[5].mxu0  ;;  %v563_v53 = vadd.f32 %v706_v47, %v651_v46 }
 0x2a5   : > { %v555_v49 = vadd.f32 %v651_v46, %v554_v48  ;;  %v707_v50 = vpop.f32.mrb[6].mxu0 }
 0x2a6   : > { %v557_v51 = vpop.f32.mrb[7].mxu0  ;;  %v566_v54 = vadd.f32 %v707_v50, %v651_v46  ;;  %572 = vst.msk [vmem:[%s280_s16 + $0x10] sm:$0xff] %vm569_vm2, %v563_v53 }
 0x2a7   : > { %570 = vst.msk [vmem:[%s280_s16] sm:$0xff] %vm569_vm2, %v555_v49  ;;  %v558_v52 = vadd.f32 %v651_v46, %v557_v51 }
 0x2a8   : > { %573 = vst.msk [vmem:[%s280_s16 + $0x18] sm:$0xff] %vm569_vm2, %v566_v54 }
 0x2a9   : > { %571 = vst.msk [vmem:[%s280_s16 + $0x8] sm:$0xff] %vm569_vm2, %v558_v52 }
 0x2aa PF: > { %s17_s24 = sadd.s32 1, %s732_s24  }
 0x2ab   : > { %p14_p4 = scmp.ge.s32.totalorder %s17_s24, 4  }
 0x2ad   :  { %16 = sbr.rel (!%p14_p4) target bundleno = 1 (0x1), region = 78 }

// kernel: tpu_custom_call.1
= control target key start
LH: loop header
LB: loop body
LE: loop exit
PB: predicated region body
PF: predicated region fallthrough
CT: control target
= control target key end

     0   :  { %s774_s24 = smov 0   ;;  %s841_s0 = inlined_call_operand.vmem [shape: f32[64,32], index: 0, kind: input, shape index: {}]   ;;  %s842_s1 = inlined_call_operand.vmem [shape: bf16[32,64], index: 1, kind: input, shape index: {}]   ;;  %s843_s2 = inlined_call_operand.vmem [shape: f32[1,64], index: 2, kind: input, shape index: {}]   ;;  %s844_s3 = inlined_call_operand.vmem [shape: bf16[64,64], index: 3, kind: input, shape index: {}]   ;;  %s845_s4 = inlined_call_operand.vmem [shape: f32[1,64], index: 4, kind: input, shape index: {}]   ;;  %s846_s5 = inlined_call_operand.vmem [shape: bf16[64,16], index: 5, kind: input, shape index: {}]   ;;  %s847_s6 = inlined_call_operand.vmem [shape: f32[1,16], index: 6, kind: input, shape index: {}]   ;;  %s848_s7 = inlined_call_operand.vmem [shape: f32[64,16], index: 7, kind: output, shape index: {}]  }
   0x1 LB: > { %s630_s25 = sadd.s32 4294967295, %s732_s24   ;;  %p634_p0 = scmp.ge.s32.totalorder %s732_s24, 1  ;;  %s732_s24 = sphi %s774_s24, %s17_s24  }
   0x2   : > { %p238_p1 = scmp.lt.s32.totalorder %s732_s24, 3 }
   0x4   : > { %p239_p2 = pnand %p634_p0, %p238_p1 }
   0x5   : > { %v716_v0 = vld [vmem:[%s842_s1] sm:$0xff] (!%p239_p2)   ;;  %s635_s28 = sshll.u32 (!%p239_p2), %s630_s25, 2  ;;  %v717_v1 = vld [vmem:[%s842_s1 + $0x8] sm:$0xff] (!%p239_p2)   ;;  %vm312_vm0 = vcmask (!%p239_p2), 261120   ;;  %v720_v10 = vld [vmem:[%s844_s3 + $0x10] sm:$0xff] (!%p239_p2)   ;;  %vm413_vm1 = vcmask (!%p239_p2), 523264  }
   0x6   : > { %242 = sbr.rel (%p239_p2) target bundleno = 682 (0x2aa), region = 48  ;;  %p271_p3 = scmp.lt.s32.totalorder (!%p239_p2), %s635_s28, 7  ;;  %676 = vmatprep.subr.bf16.mxu0 (!%p239_p2), %v716_v0  ;;  %v718_v2 = vld [vmem:[%s844_s3] sm:$0xff] (!%p239_p2)   ;;  %v719_v3 = vld [vmem:[%s844_s3 + $0x8] sm:$0xff] (!%p239_p2)   ;;  %v721_v11 = vld [vmem:[%s844_s3 + $0x18] sm:$0xff] (!%p239_p2)   ;;  %vm569_vm2 = vcmask (!%p239_p2), 130048  }
   0x7   : > { %677 = vmatpush3.bf16.msra.mxu0 (!%p239_p2), %v716_v0  ;;  %684 = vmatprep.subr.bf16.mxu1 (!%p239_p2), %v718_v2  ;;  %v722_v12 = vld [vmem:[%s846_s5] sm:$0xff] (!%p239_p2)   ;;  %v723_v13 = vld [vmem:[%s846_s5 + $0x8] sm:$0xff] (!%p239_p2)   ;;  %v724_v29 = vld [vmem:[%s846_s5 + $0x10] sm:$0xff] (!%p239_p2)  }
   0x8   : > { %678 = vmatprep.subr.bf16.mxu0 (!%p239_p2), %v717_v1  ;;  %685 = vmatpush3.bf16.msra.mxu1 (!%p239_p2), %v718_v2  ;;  %v639_v14 = vld [vmem:[%s843_s2] ss:$0 sm:$0xff] (!%p239_p2)  ;;  %v725_v30 = vld [vmem:[%s846_s5 + $0x18] sm:$0xff] (!%p239_p2)  }
   0x9   : > { %686 = vmatprep.subr.bf16.mxu1 (!%p239_p2), %v719_v3  ;;  %v644_v31 = vld [vmem:[%s845_s4] ss:$0 sm:$0xff] (!%p239_p2) }
   0xa   : > { %v651_v46 = vld [vmem:[%s847_s6] ss:$0 sm:$0xff] (!%p239_p2) }
   0xb   : > { %679 = vmatpush3.bf16.msra.mxu0 (!%p239_p2), %v717_v1 }
   0xc   : > { %687 = vmatpush3.bf16.msra.mxu1 (!%p239_p2), %v719_v3  ;;  %696 = vmatprep.subr.bf16.mxu0 (!%p239_p2), %v722_v12 }
   0xd   : > { %s850_s28 = smov (!%p271_p3, %s635_s28), 7  ;;  %688 = vmatprep.subr.bf16.mxu1 %v720_v10 }
   0xe   : > { %s636_s12 = sshll.u32 %s850_s28, 3 }
   0xf   : > { %s274_s15 = scalar_lea.vmem %s841_s0, %s636_s12  ;;  %s280_s16 = scalar_lea.vmem %s848_s7, %s636_s12 }
  0x10   : > { %v283_v4 = vld [vmem:[%s274_s15] sm:$0xff]  ;;  %v284_v5 = vld [vmem:[%s274_s15 + $0x8] sm:$0xff]  ;;  %v285_v6 = vld [vmem:[%s274_s15 + $0x10] sm:$0xff]  ;;  %689 = vmatpush3.bf16.msra.mxu1 %v720_v10 }
  0x11   : > { %v292_v7 = vpack.c.bf16 %v284_v5, %v283_v4  ;;  %v286_v8 = vld [vmem:[%s274_s15 + $0x18] sm:$0xff]  ;;  %690 = vmatprep.subr.bf16.mxu1 %v721_v11 }
  0x12   : > { %v293_v9 = vpack.c.bf16 %v286_v8, %v285_v6 }
  0x13   : > { %680 = vmatprep.mubr.msk.bf16.mxu0 %vm312_vm0, %v292_v7 }
  0x14   : > { %681 = vmatmul.mubr.msk.bf16.vlgmr.msra.gmra.mrb[0].mxu0 %vm312_vm0, %v293_v9  ;;  %691 = vmatpush3.bf16.msra.mxu1 %v721_v11 }
  0x15   : > { %697 = vmatpush3.bf16.msra.mxu0 %v722_v12 }
  0x16   : > { %698 = vmatprep.subr.bf16.mxu0 %v723_v13 }
  0x19   : > { %699 = vmatpush3.bf16.msra.mxu0 %v723_v13 }
  0x1a   : > { %700 = vmatprep.subr.bf16.mxu0 %v724_v29 }
  0x1d   : > { %701 = vmatpush3.bf16.msra.mxu0 %v724_v29 }
  0x1e   : > { %702 = vmatprep.subr.bf16.mxu0 %v725_v30 }
  0x21   : > { %703 = vmatpush3.bf16.msra.mxu0 %v725_v30 }
  0xe7   : > { %v682_v15 = vpop.f32.mrb[0].mxu0 }
  0xe8   : > { %v362_v16 = vadd.f32 %v682_v15, %v639_v14  ;;  %v353_v17 = vpop.f32.mrb[1].mxu0 }
  0xe9   : > { %v354_v18 = vadd.f32 %v639_v14, %v353_v17  ;;  %v683_v19 = vpop.f32.mrb[2].mxu0 }
  0xea   : > { %v365_v20 = vadd.f32 %v683_v19, %v639_v14  ;;  %v356_v21 = vpop.f32.mrb[3].mxu0  ;;  %v370_v23 = vmax.f32 %v362_v16, 0.0 }
  0xeb   : > { %v357_v22 = vadd.f32 %v639_v14, %v356_v21  ;;  %v368_v25 = vmax.f32 %v354_v18, 0.0 }
  0xec   : > { %v371_v24 = vmax.f32 %v365_v20, 0.0 }
  0xed   : > { %v369_v26 = vmax.f32 %v357_v22, 0.0 }
  0xee   : > { %v382_v27 = vpack.c.bf16 %v371_v24, %v370_v23 }
  0xef   : > { %v381_v28 = vpack.c.bf16 %v369_v26, %v368_v25 }
  0xf1   : > { %692 = vmatprep.mubr.msk.bf16.mxu1 %vm413_vm1, %v381_v28 }
  0xf2   : > { %693 = vmatmul.mubr.msk.bf16.vlgmr.msra.gmra.mrb[0].mxu1 %vm413_vm1, %v382_v27 }
 0x1c5   : > { %v694_v32 = vpop.f32.mrb[0].mxu1 }
 0x1c6   : > { %v463_v33 = vadd.f32 %v694_v32, %v644_v31  ;;  %v454_v34 = vpop.f32.mrb[1].mxu1 }
 0x1c7   : > { %v455_v35 = vadd.f32 %v644_v31, %v454_v34  ;;  %v695_v36 = vpop.f32.mrb[2].mxu1 }
 0x1c8   : > { %v466_v37 = vadd.f32 %v695_v36, %v644_v31  ;;  %v457_v38 = vpop.f32.mrb[3].mxu1  ;;  %v471_v40 = vmax.f32 %v463_v33, 0.0 }
 0x1c9   : > { %v458_v39 = vadd.f32 %v644_v31, %v457_v38  ;;  %v469_v42 = vmax.f32 %v455_v35, 0.0 }
 0x1ca   : > { %v472_v41 = vmax.f32 %v466_v37, 0.0 }
 0x1cb   : > { %v470_v43 = vmax.f32 %v458_v39, 0.0 }
 0x1cc   : > { %v483_v44 = vpack.c.bf16 %v472_v41, %v471_v40 }
 0x1cd   : > { %v482_v45 = vpack.c.bf16 %v470_v43, %v469_v42 }
 0x1cf   : > { %704 = vmatprep.mubr.msk.bf16.mxu0 %vm413_vm1, %v482_v45 }
 0x1d0   : > { %705 = vmatmul.mubr.msk.bf16.vlgmr.msra.gmra.mrb[4].mxu0 %vm413_vm1, %v483_v44 }
 0x2a3   : > { %v706_v47 = vpop.f32.mrb[4].mxu0 }
 0x2a4   : > { %v554_v48 = vpop.f32.mrb[5].mxu0  ;;  %v563_v53 = vadd.f32 %v706_v47, %v651_v46 }
 0x2a5   : > { %v555_v49 = vadd.f32 %v651_v46, %v554_v48  ;;  %v707_v50 = vpop.f32.mrb[6].mxu0 }
 0x2a6   : > { %v557_v51 = vpop.f32.mrb[7].mxu0  ;;  %v566_v54 = vadd.f32 %v707_v50, %v651_v46  ;;  %572 = vst.msk [vmem:[%s280_s16 + $0x10] sm:$0xff] %vm569_vm2, %v563_v53 }
 0x2a7   : > { %570 = vst.msk [vmem:[%s280_s16] sm:$0xff] %vm569_vm2, %v555_v49  ;;  %v558_v52 = vadd.f32 %v651_v46, %v557_v51 }
 0x2a8   : > { %573 = vst.msk [vmem:[%s280_s16 + $0x18] sm:$0xff] %vm569_vm2, %v566_v54 }
 0x2a9   : > { %571 = vst.msk [vmem:[%s280_s16 + $0x8] sm:$0xff] %vm569_vm2, %v558_v52 }
 0x2aa PF: > { %s17_s24 = sadd.s32 1, %s732_s24  }
 0x2ab   : > { %p14_p4 = scmp.ge.s32.totalorder %s17_s24, 4  }
 0x2ad   :  { %16 = sbr.rel (!%p14_p4) target bundleno = 1 (0x1), region = 78 }

</bundles_post_ra>
